<compile_context>
chip_gen: v6e
topology: v6e:2x2x1
jax: 0.10.0
libtpu: 0.0.40
codegen_flags: <defaults>
</compile_context>

<pallas_src>
import functools

import jax
import jax.numpy as jnp
from jax.experimental import pallas as pl
from jax.experimental.pallas import tpu as pltpu

FLOOR = 1e-10
BESSEL = False


def _round_up(x, m):
    return ((x + m - 1) // m) * m


def _cdiv(a, b):
    return -(-a // b)


def _default_budgets(itemsize):
    """Generation-aware (tile_budget_bytes, vmem_limit_bytes)."""
    vmem_cap = 128 * 1024 * 1024
    try:
        info = pltpu.get_tpu_info()
        vmem_cap = int(getattr(info, "vmem_capacity_bytes", vmem_cap))
    except Exception:
        pass
    if vmem_cap >= 96 * 1024 * 1024:         # v5e / v6e: 128 MiB VMEM
        tile_budget, vmem_limit = 24 << 20, 96 << 20
    else:                                     # v7x: 64 MiB VMEM
        tile_budget, vmem_limit = 10 << 20, 44 << 20
    if itemsize < 4:
        # Leave headroom in case the f32 upcast of a sub-f32 tile materializes.
        tile_budget //= 2
    return tile_budget, vmem_limit


def _choose_blocks(B, Tf, Deff, itemsize, spack, budget):
    """Pick (bb, dblk, tt) for the (batch, folded-feature, time) blocking."""
    bb = B if B <= 8 else 8
    nb = _cdiv(B, bb)

    # Column block over the folded feature axis: split only when the batch
    # axis alone gives a single parallel block, so both v7x TensorCores (and
    # megacore sharding generally) get independent, lane-aligned work.
    dblk = Deff
    if nb == 1 and Deff >= 256 and Deff % 128 == 0:
        half = Deff // 2
        dblk = half if half % 128 == 0 else 128

    row_bytes = max(bb * dblk * itemsize, 1)
    max_t = max(spack, budget // row_bytes)
    if Tf <= max_t:
        tt = _round_up(Tf, spack)
        if B > 8:
            # Whole time axis fits in one step: spend leftover budget on more
            # batch rows per step (multiples of 8) to amortize per-step cost.
            max_bb = budget // max(tt * dblk * itemsize, 1)
            bb = max(8, min(_round_up(B, 8), (max_bb // 8) * 8))
    else:
        tt = max(spack, (max_t // spack) * spack)
    return bb, dblk, tt


def _stats_pool_kernel(x_ref, mean_ref, std_ref, sum_ref, sumsq_ref, *,
                       inv_t, inv_denom, fold, d_out, floor):
    """Per-tile body.

    x_ref:     (bb, tt, dblk) input tile (time x folded-feature lanes).
    mean_ref:  (bb, d_out) output tile, d_out = dblk // fold.
    std_ref:   (bb, d_out) output tile.
    sum_ref:   (bb, 8, dblk) f32 scratch (per-sublane-row partial sums).
    sumsq_ref: (bb, 8, dblk) f32 scratch (per-sublane-row partial sums of sq).
    """
    k = pl.program_id(2)

    @pl.when(k == 0)
    def _init():
        sum_ref[...] = jnp.zeros_like(sum_ref)
        sumsq_ref[...] = jnp.zeros_like(sumsq_ref)

    x = x_ref[...]
    if x.dtype != jnp.float32:
        # Accumulation is always f32.
        # TODO(synk): for bf16 on v7x, the T-contraction could be offloaded to
        # the otherwise-idle MXU (ones @ x, ones @ x*x) to stay off the VALU
        # slots; not done here to keep the kernel simple and robust.
        x = x.astype(jnp.float32)
    bb, tt, dblk = x.shape
    # Defer the 8->1 cross-sublane (XLU) reduce to finalize: splitting tt into
    # (tt//8, 8) is a pure view on the (sublane, lane) layout, so the per-step
    # reduction over the tt//8 groups is plain vreg (VALU) adds.
    xg = x.reshape(bb, tt // 8, 8, dblk)
    sum_ref[...] += jnp.sum(xg, axis=1)
    sumsq_ref[...] += jnp.sum(xg * xg, axis=1)

    @pl.when(k == pl.num_programs(2) - 1)
    def _finalize():
        s = jnp.sum(sum_ref[...], axis=1)       # (bb, dblk): one 8->1 reduce
        q = jnp.sum(sumsq_ref[...], axis=1)
        if fold > 1:
            # Undo the time->lane fold: lane group i holds time steps with
            # t % fold == i; sum the fold groups (once per output tile).
            s_f = s[:, 0:d_out]
            q_f = q[:, 0:d_out]
            for i in range(1, fold):
                s_f = s_f + s[:, i * d_out:(i + 1) * d_out]
                q_f = q_f + q[:, i * d_out:(i + 1) * d_out]
            s, q = s_f, q_f
        mean = s * inv_t
        # One-pass moments: sum((x - mean)^2) == sumsq - sum * mean (f32).
        # TODO(synk): for |mean| >> std a shifted / Welford-style accumulation
        # would be more robust against cancellation; not needed for typical
        # stats-pooling inputs.
        numerator = q - s * mean
        std = jnp.sqrt(jnp.maximum(numerator, floor) * inv_denom)
        mean_ref[...] = mean.astype(mean_ref.dtype)
        std_ref[...] = std.astype(std_ref.dtype)


def stats_pool(x, *, floor=FLOOR, bessel=BESSEL,
               tile_budget_bytes=None, vmem_limit_bytes=None):
    """x: (B, T, D) -> (B, 2D) via a Pallas TPU kernel (StatsPool.forward)."""
    B, T, D = x.shape
    out_dtype = x.dtype
    itemsize = jnp.dtype(x.dtype).itemsize
    spack = {4: 8, 2: 16, 1: 32}.get(itemsize, 8)

    default_budget, default_limit = _default_budgets(itemsize)
    if tile_budget_bytes is None:
        tile_budget_bytes = default_budget
    if vmem_limit_bytes is None:
        vmem_limit_bytes = default_limit

    # Lane fold: pack `fold` consecutive time steps into the lane axis when
    # D < 128 so each vreg is fully occupied (exact for sum / sum of squares).
    fold = 1 if D >= 128 else max(1, min(128 // D, 16))
    Deff = fold * D
    Tf = _cdiv(T, fold)

    bb, dblk, tt = _choose_blocks(B, Tf, Deff, itemsize, spack,
                                  tile_budget_bytes)
    Bp = _round_up(B, bb)
    Tfp = _round_up(Tf, tt)
    Tpad = Tfp * fold

    if Bp != B or Tpad != T:
        # Zero padding is exact: padded time rows add 0 to both moments;
        # padded batch rows are sliced off below.
        x = jnp.pad(x, ((0, Bp - B), (0, Tpad - T), (0, 0)))
    if fold > 1:
        x = x.reshape(Bp, Tfp, Deff)   # contiguous regroup: layout no-op

    denom = (T - 1) if bessel else T
    inv_denom = (1.0 / denom) if denom != 0 else float("inf")
    d_out = dblk // fold
    kernel = functools.partial(
        _stats_pool_kernel,
        inv_t=1.0 / float(T), inv_denom=float(inv_denom),
        fold=fold, d_out=d_out, floor=float(floor))

    means, stds = pl.pallas_call(
        kernel,
        out_shape=(jax.ShapeDtypeStruct((Bp, D), out_dtype),
                   jax.ShapeDtypeStruct((Bp, D), out_dtype)),
        grid_spec=pltpu.PrefetchScalarGridSpec(
            num_scalar_prefetch=0,
            grid=(Bp // bb, Deff // dblk, Tfp // tt),   # reduction (T) last
            in_specs=[pl.BlockSpec((bb, tt, dblk), lambda b, d, k: (b, k, d))],
            out_specs=[pl.BlockSpec((bb, d_out), lambda b, d, k: (b, d)),
                       pl.BlockSpec((bb, d_out), lambda b, d, k: (b, d))],
            scratch_shapes=[pltpu.VMEM((bb, 8, dblk), jnp.float32),   # sum
                            pltpu.VMEM((bb, 8, dblk), jnp.float32)],  # sum sq
        ),
        compiler_params=pltpu.CompilerParams(
            dimension_semantics=("parallel", "parallel", "arbitrary"),
            vmem_limit_bytes=vmem_limit_bytes),
    )(x)

    if Bp != B:
        means = means[:B]
        stds = stds[:B]
    # Tiny (B, 2D) concat done in the wrapper so both kernel stores stay
    # full-width and lane-aligned.
    return jnp.concatenate([means, stds], axis=1)


def stats_pool_ref(x, floor=FLOOR, bessel=BESSEL):
    """Pure-JAX reference mirroring the PyTorch forward."""
    t = x.shape[1]
    if bessel:
        t = t - 1
    means = jnp.mean(x, axis=1)
    residuals = x - means[:, None, :]
    numerator = jnp.sum(residuals ** 2, axis=1)
    stds = jnp.sqrt(jnp.maximum(numerator, floor) / t)
    return jnp.concatenate([means, stds], axis=1)


if __name__ == "__main__":
    key = jax.random.PRNGKey(0)

    # Case 1: small typical shape; exercises the D<128 lane-fold (f=4).
    B, T, D = 2, 8, 32
    x = jax.random.normal(key, (B, T, D), dtype=jnp.float32)
    out = jax.block_until_ready(stats_pool(x))
    ref = stats_pool_ref(x)
    assert out.shape == (B, 2 * D), out.shape
    assert jnp.allclose(out, ref, atol=3e-5, rtol=1e-5), (
        float(jnp.max(jnp.abs(out - ref))))

    # Case 2: force multiple T-reduction grid steps (accumulate/finalize path).
    B, T, D = 3, 24, 128
    x = jax.random.normal(key, (B, T, D), dtype=jnp.float32)
    out = jax.block_until_ready(stats_pool(x, tile_budget_bytes=16 * 1024))
    ref = stats_pool_ref(x)
    assert jnp.allclose(out, ref, atol=3e-5, rtol=1e-5), (
        float(jnp.max(jnp.abs(out - ref))))

    # Case 3: batch padding (B not a multiple of 8) + lane-fold (f=2).
    B, T, D = 10, 12, 64
    x = jax.random.normal(key, (B, T, D), dtype=jnp.float32)
    out = jax.block_until_ready(stats_pool(x))
    ref = stats_pool_ref(x)
    assert out.shape == (B, 2 * D), out.shape
    assert jnp.allclose(out, ref, atol=3e-5, rtol=1e-5), (
        float(jnp.max(jnp.abs(out - ref))))

    # Case 4: D >= 256 with a single batch block -> feature-column split
    # (second parallel grid axis for v7x's two TensorCores).
    B, T, D = 2, 32, 256
    x = jax.random.normal(key, (B, T, D), dtype=jnp.float32)
    out = jax.block_until_ready(stats_pool(x))
    ref = stats_pool_ref(x)
    assert jnp.allclose(out, ref, atol=3e-5, rtol=1e-5), (
        float(jnp.max(jnp.abs(out - ref))))

    # Case 5: bf16 input (f32 accumulation, sublane-pack-aware time blocking).
    B, T, D = 4, 16, 64
    x32 = jax.random.normal(key, (B, T, D), dtype=jnp.float32)
    xb = x32.astype(jnp.bfloat16)
    out = jax.block_until_ready(stats_pool(xb))
    ref = stats_pool_ref(xb.astype(jnp.float32)).astype(jnp.bfloat16)
    assert out.dtype == jnp.bfloat16, out.dtype
    assert jnp.allclose(out.astype(jnp.float32), ref.astype(jnp.float32),
                        atol=3e-2, rtol=3e-2), (
        float(jnp.max(jnp.abs(out.astype(jnp.float32) -
                              ref.astype(jnp.float32)))))

    print("KERNEL_OK")
</pallas_src>

<mosaic_0001>
module attributes {stable_mosaic.version = 11 : i64} {
  func.func @_stats_pool_kernel(%arg0: i32, %arg1: i32, %arg2: i32, %arg3: memref<2x8x128xf32, #tpu.memory_space<vmem>>, %arg4: memref<2x32xf32, #tpu.memory_space<vmem>>, %arg5: memref<2x32xf32, #tpu.memory_space<vmem>>, %arg6: memref<2x8x128xf32, #tpu.memory_space<vmem>>, %arg7: memref<2x8x128xf32, #tpu.memory_space<vmem>>) attributes {dimension_semantics = [#tpu.dimension_semantics<parallel>, #tpu.dimension_semantics<parallel>, #tpu.dimension_semantics<arbitrary>], iteration_bounds = array<i64: 1, 1, 1>, scalar_prefetch = 0 : i64, scratch_operands = 2 : i64, tpu.core_type = #tpu.core_type<tc>, window_params = [{transform_indices = @transform_0, window_bounds = array<i64: 2, 8, 128>}, {transform_indices = @transform_1, window_bounds = array<i64: 2, 32>}, {transform_indices = @transform_2, window_bounds = array<i64: 2, 32>}]} {
    %c0_i32 = arith.constant 0 : i32
    %0 = arith.cmpi eq, %arg2, %c0_i32 : i32
    %1 = arith.extui %0 : i1 to i32
    %c0_i32_0 = arith.constant 0 : i32
    %2 = arith.cmpi ne, %1, %c0_i32_0 : i32
    scf.if %2 {
      %cst_18 = arith.constant 0.000000e+00 : f32
      %17 = vector.broadcast %cst_18 : f32 to vector<2x8x128xf32>
      %c0_19 = arith.constant 0 : index
      %c0_20 = arith.constant 0 : index
      %c0_21 = arith.constant 0 : index
      %18 = vector.load %arg6[%c0_19, %c0_20, %c0_21] : memref<2x8x128xf32, #tpu.memory_space<vmem>>, vector<2x8x128xf32>
      tpu.vector_store %arg6[%c0_19, %c0_20, %c0_21], %17 {strides = array<i32>} : memref<2x8x128xf32, #tpu.memory_space<vmem>>, vector<2x8x128xf32>,
      %cst_22 = arith.constant 0.000000e+00 : f32
      %19 = vector.broadcast %cst_22 : f32 to vector<2x8x128xf32>
      %c0_23 = arith.constant 0 : index
      %c0_24 = arith.constant 0 : index
      %c0_25 = arith.constant 0 : index
      %20 = vector.load %arg7[%c0_23, %c0_24, %c0_25] : memref<2x8x128xf32, #tpu.memory_space<vmem>>, vector<2x8x128xf32>
      tpu.vector_store %arg7[%c0_23, %c0_24, %c0_25], %19 {strides = array<i32>} : memref<2x8x128xf32, #tpu.memory_space<vmem>>, vector<2x8x128xf32>,
    } else {
    }
    %c0 = arith.constant 0 : index
    %c0_1 = arith.constant 0 : index
    %c0_2 = arith.constant 0 : index
    %3 = vector.load %arg3[%c0, %c0_1, %c0_2] : memref<2x8x128xf32, #tpu.memory_space<vmem>>, vector<2x8x128xf32>
    %4 = vector.shape_cast %3 : vector<2x8x128xf32> to vector<2x1x8x128xf32>
    %c0_3 = arith.constant 0 : index
    %c0_4 = arith.constant 0 : index
    %c0_5 = arith.constant 0 : index
    %5 = vector.load %arg6[%c0_3, %c0_4, %c0_5] : memref<2x8x128xf32, #tpu.memory_space<vmem>>, vector<2x8x128xf32>
    %cst = arith.constant dense<0.000000e+00> : vector<2x8x128xf32>
    %6 = vector.multi_reduction <add>, %4, %cst [1] : vector<2x1x8x128xf32> to vector<2x8x128xf32>
    %7 = arith.addf %5, %6 : vector<2x8x128xf32>
    %c0_6 = arith.constant 0 : index
    %c0_7 = arith.constant 0 : index
    %c0_8 = arith.constant 0 : index
    %8 = vector.load %arg6[%c0_6, %c0_7, %c0_8] : memref<2x8x128xf32, #tpu.memory_space<vmem>>, vector<2x8x128xf32>
    tpu.vector_store %arg6[%c0_6, %c0_7, %c0_8], %7 {strides = array<i32>} : memref<2x8x128xf32, #tpu.memory_space<vmem>>, vector<2x8x128xf32>,
    %c0_9 = arith.constant 0 : index
    %c0_10 = arith.constant 0 : index
    %c0_11 = arith.constant 0 : index
    %9 = vector.load %arg7[%c0_9, %c0_10, %c0_11] : memref<2x8x128xf32, #tpu.memory_space<vmem>>, vector<2x8x128xf32>
    %10 = arith.mulf %4, %4 : vector<2x1x8x128xf32>
    %cst_12 = arith.constant dense<0.000000e+00> : vector<2x8x128xf32>
    %11 = vector.multi_reduction <add>, %10, %cst_12 [1] : vector<2x1x8x128xf32> to vector<2x8x128xf32>
    %12 = arith.addf %9, %11 : vector<2x8x128xf32>
    %c0_13 = arith.constant 0 : index
    %c0_14 = arith.constant 0 : index
    %c0_15 = arith.constant 0 : index
    %13 = vector.load %arg7[%c0_13, %c0_14, %c0_15] : memref<2x8x128xf32, #tpu.memory_space<vmem>>, vector<2x8x128xf32>
    tpu.vector_store %arg7[%c0_13, %c0_14, %c0_15], %12 {strides = array<i32>} : memref<2x8x128xf32, #tpu.memory_space<vmem>>, vector<2x8x128xf32>,
    %c0_i32_16 = arith.constant 0 : i32
    %14 = arith.cmpi eq, %arg2, %c0_i32_16 : i32
    %15 = arith.extui %14 : i1 to i32
    %c0_i32_17 = arith.constant 0 : i32
    %16 = arith.cmpi ne, %15, %c0_i32_17 : i32
    scf.if %16 {
      %c0_18 = arith.constant 0 : index
      %c0_19 = arith.constant 0 : index
      %c0_20 = arith.constant 0 : index
      %17 = vector.load %arg6[%c0_18, %c0_19, %c0_20] : memref<2x8x128xf32, #tpu.memory_space<vmem>>, vector<2x8x128xf32>
      %cst_21 = arith.constant dense<0.000000e+00> : vector<2x128xf32>
      %18 = vector.multi_reduction <add>, %17, %cst_21 [1] : vector<2x8x128xf32> to vector<2x128xf32>
      %c0_22 = arith.constant 0 : index
      %c0_23 = arith.constant 0 : index
      %c0_24 = arith.constant 0 : index
      %19 = vector.load %arg7[%c0_22, %c0_23, %c0_24] : memref<2x8x128xf32, #tpu.memory_space<vmem>>, vector<2x8x128xf32>
      %cst_25 = arith.constant dense<0.000000e+00> : vector<2x128xf32>
      %20 = vector.multi_reduction <add>, %19, %cst_25 [1] : vector<2x8x128xf32> to vector<2x128xf32>
      %21 = vector.extract_strided_slice %18 {offsets = [0, 0], sizes = [2, 32], strides = [1, 1]} : vector<2x128xf32> to vector<2x32xf32>
      %22 = vector.extract_strided_slice %20 {offsets = [0, 0], sizes = [2, 32], strides = [1, 1]} : vector<2x128xf32> to vector<2x32xf32>
      %23 = vector.extract_strided_slice %18 {offsets = [0, 32], sizes = [2, 32], strides = [1, 1]} : vector<2x128xf32> to vector<2x32xf32>
      %24 = arith.addf %21, %23 : vector<2x32xf32>
      %25 = vector.extract_strided_slice %20 {offsets = [0, 32], sizes = [2, 32], strides = [1, 1]} : vector<2x128xf32> to vector<2x32xf32>
      %26 = arith.addf %22, %25 : vector<2x32xf32>
      %27 = vector.extract_strided_slice %18 {offsets = [0, 64], sizes = [2, 32], strides = [1, 1]} : vector<2x128xf32> to vector<2x32xf32>
      %28 = arith.addf %24, %27 : vector<2x32xf32>
      %29 = vector.extract_strided_slice %20 {offsets = [0, 64], sizes = [2, 32], strides = [1, 1]} : vector<2x128xf32> to vector<2x32xf32>
      %30 = arith.addf %26, %29 : vector<2x32xf32>
      %31 = vector.extract_strided_slice %18 {offsets = [0, 96], sizes = [2, 32], strides = [1, 1]} : vector<2x128xf32> to vector<2x32xf32>
      %32 = arith.addf %28, %31 : vector<2x32xf32>
      %33 = vector.extract_strided_slice %20 {offsets = [0, 96], sizes = [2, 32], strides = [1, 1]} : vector<2x128xf32> to vector<2x32xf32>
      %34 = arith.addf %30, %33 : vector<2x32xf32>
      %cst_26 = arith.constant 1.250000e-01 : f32
      %35 = vector.broadcast %cst_26 : f32 to vector<2x32xf32>
      %36 = arith.mulf %32, %35 : vector<2x32xf32>
      %37 = arith.mulf %32, %36 : vector<2x32xf32>
      %38 = arith.subf %34, %37 : vector<2x32xf32>
      %cst_27 = arith.constant 1.000000e-10 : f32
      %39 = vector.broadcast %cst_27 : f32 to vector<2x32xf32>
      %40 = arith.maximumf %38, %39 : vector<2x32xf32>
      %cst_28 = arith.constant 1.250000e-01 : f32
      %41 = vector.broadcast %cst_28 : f32 to vector<2x32xf32>
      %42 = arith.mulf %40, %41 : vector<2x32xf32>
      %43 = math.sqrt %42 : vector<2x32xf32>
      %c0_29 = arith.constant 0 : index
      %c0_30 = arith.constant 0 : index
      %44 = vector.load %arg4[%c0_29, %c0_30] : memref<2x32xf32, #tpu.memory_space<vmem>>, vector<2x32xf32>
      tpu.vector_store %arg4[%c0_29, %c0_30], %36 {strides = array<i32>} : memref<2x32xf32, #tpu.memory_space<vmem>>, vector<2x32xf32>,
      %c0_31 = arith.constant 0 : index
      %c0_32 = arith.constant 0 : index
      %45 = vector.load %arg5[%c0_31, %c0_32] : memref<2x32xf32, #tpu.memory_space<vmem>>, vector<2x32xf32>
      tpu.vector_store %arg5[%c0_31, %c0_32], %43 {strides = array<i32>} : memref<2x32xf32, #tpu.memory_space<vmem>>, vector<2x32xf32>,
    } else {
    }
    return
  }
  func.func @transform_0(%arg0: i32, %arg1: i32, %arg2: i32) -> (i32, i32, i32) {
    %c0_i32 = arith.constant 0 : i32
    return %arg0, %arg2, %arg1 : i32, i32, i32
  }
  func.func @transform_1(%arg0: i32, %arg1: i32, %arg2: i32) -> (i32, i32) {
    %c0_i32 = arith.constant 0 : i32
    return %arg0, %arg1 : i32, i32
  }
  func.func @transform_2(%arg0: i32, %arg1: i32, %arg2: i32) -> (i32, i32) {
    %c0_i32 = arith.constant 0 : i32
    return %arg0, %arg1 : i32, i32
  }
}

</mosaic_0001>

<bundles_post_ra>
// kernel: tpu_custom_call.1
= control target key start
LH: loop header
LB: loop body
LE: loop exit
PB: predicated region body
PF: predicated region fallthrough
CT: control target
= control target key end

     0   :  { %8 = vsyncpa [#allocation5], 0  ;;  %s318_s0 = inlined_call_operand.hbm [shape: f32[2,8,128], index: 0, kind: input, shape index: {}]   ;;  %s319_s1 = inlined_call_operand.hbm [shape: f32[2,32], index: 1, kind: output, shape index: {0}]   ;;  %s320_s2 = inlined_call_operand.hbm [shape: f32[2,32], index: 2, kind: output, shape index: {1}]  }
   0x1   :  { %9 = vsyncpa [#allocation6], 0 }
   0x2   :  { %10 = vsyncpa [#allocation9], 0  ;;  %s282_s9 = smov [#allocation4]  }
   0x3   :  { %s16_s10 = sshll.u32 %s282_s9, 4  ;;  %s17_s10 = int_to_ptr.vmem [resolvable:$true] %s16_s10 }
   0x4   :  { %s224_s11 = scalar_lea.vmem %s17_s10, 256  ;;  %p229_p1 = scmp.lt.s32.totalorder %s17_s10, %s17_s10 }
   0x5   :  { %p225_p0 = scmp.ne.s32.totalorder %s17_s10, %s224_s11  ;;  %p230_p2 = scmp.lt.s32.totalorder %s224_s11, %s224_s11 }
   0x7   :  { %p231_p3 = por %p230_p2, %p229_p1 }
   0x9   :  { %p232_p4 = pnand %p231_p3, %p225_p0 }
   0xb   :  { %235 = shalt.err (!%p232_p4)
}
   0xc   :  { %s283_s12 = smov 128   ;;  %s284_s13 = smov 8  }
   0xd   :  { %22 = dma.hbm_to_vmem [thread:$0]  %s318_s0, 256, %s17_s10, [#allocation5], %s283_s12, %s283_s12, %s284_s13  }
   0xe   :  { %276 = dma.done.wait [#allocation5], 256  }
   0xf   :  { %277 = vsyncadd [#allocation5], 4294967040  ;;  %v35_v0 = vld [vmem:[#allocation4 + $0x8] sm:$0xff]  ;;  %v34_v1 = vld [vmem:[#allocation4] sm:$0xff]  ;;  %s285_s0 = smov 64   ;;  %s286_s16 = smov 96  }
  0x10   :  { %v65_v2 = vrot.slane %v35_v0, 4  ;;  %v59_v3 = vrot.slane %v34_v1, 4  ;;  %v47_v4 = vmul.f32 %v35_v0, %v35_v0  ;;  %v46_v5 = vmul.f32 %v34_v1, %v34_v1  ;;  %s287_s17 = smov 32   ;;  %s288_s18 = smov [#allocation7]  }
  0x11   :  { %s181_s19 = sshll.u32 %s288_s18, 4  ;;  %vm164_vm0 = vcmask 1041409   ;;  %vm167_vm1 = vcmask 254976   ;;  %s182_s19 = int_to_ptr.vmem [resolvable:$true] %s181_s19 }
  0x12   :  { %v66_v6 = vadd.f32 %v65_v2, %v35_v0  ;;  %v60_v7 = vadd.f32 %v59_v3, %v34_v1  ;;  %v79_v8 = vrot.slane %v47_v4, 4  ;;  %v73_v12 = vrot.slane %v46_v5, 4  ;;  %s236_s20 = scalar_lea.vmem %s182_s19, 32  ;;  %p241_p6 = scmp.lt.s32.totalorder %s182_s19, %s182_s19 }
  0x13   :  { %p237_p5 = scmp.ne.s32.totalorder %s182_s19, %s236_s20  ;;  %p242_p7 = scmp.lt.s32.totalorder %s236_s20, %s236_s20 }
  0x14   :  { %v67_v9 = vrot.slane %v66_v6, 2  ;;  %v61_v10 = vrot.slane %v60_v7, 2  ;;  %v80_v11 = vadd.f32 %v79_v8, %v47_v4  ;;  %v74_v19 = vadd.f32 %v73_v12, %v46_v5 }
  0x15   :  { %p243_p8 = por %p242_p7, %p241_p6 }
  0x16   :  { %v68_v13 = vadd.f32 %v67_v9, %v66_v6  ;;  %v62_v14 = vadd.f32 %v61_v10, %v60_v7  ;;  %v81_v15 = vrot.slane %v80_v11, 2  ;;  %v75_v23 = vrot.slane %v74_v19, 2 }
  0x17   :  { %p244_p9 = pnand %p243_p8, %p237_p5 }
  0x18   :  { %v69_v16 = vrot.slane %v68_v13, 1  ;;  %v63_v17 = vrot.slane %v62_v14, 1  ;;  %v82_v18 = vadd.f32 %v81_v15, %v80_v11  ;;  %v76_v25 = vadd.f32 %v75_v23, %v74_v19 }
  0x1a   :  { %v70_v20 = vadd.f32 %v69_v16, %v68_v13  ;;  %v64_v21 = vadd.f32 %v63_v17, %v62_v14  ;;  %v83_v22 = vrot.slane %v82_v18, 1  ;;  %v77_v26 = vrot.slane %v76_v25, 1 }
  0x1c   :  { %107 = vrot.lane.b32.xlu1 %v70_v20, %s285_s0  ;;  %89 = vrot.lane.b32.xlu0 %v70_v20, %s286_s16  ;;  %v84_v24 = vadd.f32 %v83_v22, %v82_v18  ;;  %v78_v27 = vadd.f32 %v77_v26, %v76_v25 }
  0x20   :  { %123 = vrot.lane.b32.xlu1 %v70_v20, %s287_s17  ;;  %87 = vrot.lane.b32.xlu0 %v64_v21, %s286_s16 }
  0x24   :  { %99 = vrot.lane.b32.xlu1 %v84_v24, %s286_s16  ;;  %105 = vrot.lane.b32.xlu0 %v64_v21, %s285_s0 }
  0x28   :  { %115 = vrot.lane.b32.xlu1 %v84_v24, %s285_s0  ;;  %121 = vrot.lane.b32.xlu0 %v64_v21, %s287_s17 }
  0x2c   :  { %113 = vrot.lane.b32.xlu1 %v78_v27, %s285_s0  ;;  %97 = vrot.lane.b32.xlu0 %v78_v27, %s286_s16 }
  0x30   :  { %129 = vrot.lane.b32.xlu1 %v78_v27, %s287_s17  ;;  %131 = vrot.lane.b32.xlu0 %v84_v24, %s287_s17 }
  0x8e   :  { %v108_v28 = vpop.permute.xlu1 %107  ;;  %v90_v29 = vpop.permute.xlu0 %89 }
  0x8f   :  { %v94_v30 = vadd.f32 %v90_v29, %v70_v20 }
  0x91   :  { %v112_v31 = vadd.f32 %v108_v28, %v94_v30 }
  0x92   :  { %v124_v32 = vpop.permute.xlu1 %123  ;;  %v88_v33 = vpop.permute.xlu0 %87 }
  0x93   :  { %v128_v34 = vadd.f32 %v124_v32, %v112_v31  ;;  %v93_v37 = vadd.f32 %v88_v33, %v64_v21 }
  0x95   :  { %v138_v38 = vmul.f32 0.125, %v128_v34 }
  0x96   :  { %v100_v35 = vpop.permute.xlu1 %99  ;;  %v106_v36 = vpop.permute.xlu0 %105 }
  0x97   :  { %v111_v39 = vadd.f32 %v106_v36, %v93_v37  ;;  %v163_v43 = vrot.slane %v138_v38, 7  ;;  %v104_v44 = vadd.f32 %v100_v35, %v84_v24 }
  0x9a   :  { %v116_v40 = vpop.permute.xlu1 %115  ;;  %v122_v41 = vpop.permute.xlu0 %121 }
  0x9b   :  { %v127_v42 = vadd.f32 %v122_v41, %v111_v39  ;;  %v120_v50 = vadd.f32 %v116_v40, %v104_v44 }
  0x9d   :  { %v137_v45 = vmul.f32 0.125, %v127_v42 }
  0x9e   :  { %v114_v46 = vpop.permute.xlu1 %113  ;;  %v98_v47 = vpop.permute.xlu0 %97 }
  0x9f   :  { %v103_v48 = vadd.f32 %v98_v47, %v78_v27  ;;  %v165_v49 = vsel %vm164_vm0, %v163_v43, %v137_v45 }
  0xa0   :  { %168 = vst.msk [vmem:[#allocation7] sm:$0x3] %vm167_vm1, %v165_v49 }
  0xa1   :  { %v119_v51 = vadd.f32 %v114_v46, %v103_v48 }
  0xa2   :  { %247 = shalt.err (!%p244_p9)
}
  0xa3   :  { %184 = dma.vmem_to_hbm [thread:$0]  %s182_s19, 32, %s319_s1, [#allocation6]   ;;  %v130_v52 = vpop.permute.xlu1 %129  ;;  %v132_v53 = vpop.permute.xlu0 %131  ;;  %v140_v54 = vmul.f32 %v138_v38, %v128_v34  ;;  %v139_v55 = vmul.f32 %v137_v45, %v127_v42 }
  0xa4   :  { %v135_v56 = vadd.f32 %v130_v52, %v119_v51  ;;  %v136_v57 = vadd.f32 %v132_v53, %v120_v50  ;;  %s289_s1 = smov [#allocation8]  }
  0xa5   :  { %s191_s23 = sshll.u32 %s289_s1, 4  ;;  %s192_s23 = int_to_ptr.vmem [resolvable:$true] %s191_s23 }
  0xa6   :  { %v141_v58 = vsub.f32 %v135_v56, %v139_v55  ;;  %v142_v59 = vsub.f32 %v136_v57, %v140_v54  ;;  %s256_s24 = scalar_lea.vmem %s192_s23, 32  ;;  %p261_p11 = scmp.lt.s32.totalorder %s192_s23, %s192_s23 }
  0xa7   :  { %p257_p10 = scmp.ne.s32.totalorder %s192_s23, %s256_s24  ;;  %p262_p12 = scmp.lt.s32.totalorder %s256_s24, %s256_s24 }
  0xa8   :  { %v143_v60 = vmax.f32 %v141_v58, 1e-10  ;;  %v144_v61 = vmax.f32 %v142_v59, 1e-10 }
  0xa9   :  { %p263_p13 = por %p262_p12, %p261_p11 }
  0xaa   :  { %v145_v62 = vmul.f32 0.125, %v143_v60  ;;  %v146_v63 = vmul.f32 0.125, %v144_v61 }
  0xab   :  { %p264_p0 = pnand %p263_p13, %p257_p10 }
  0xac   :  { %212 = vrsqrt.f32 %v145_v62  ;;  %vm149_vm2 = vcmp.eq.f32.partialorder %v145_v62, inf  ;;  %vm156_vm3 = vcmp.eq.f32.partialorder %v146_v63, inf  ;;  %v159_v4 = vand.u32 2147483648, %v146_v63 }
  0xad   :  { %214 = vrsqrt.f32 %v146_v63  ;;  %vm158_vm4 = vcmp.eq.f32.partialorder %v146_v63, 0.0  ;;  %v152_v7 = vand.u32 2147483648, %v145_v62  ;;  %vm151_vm5 = vcmp.eq.f32.partialorder %v145_v62, 0.0 }
  0xb9   :  { %v213_v0 = vpop.eup %212 }
  0xba   :  { %v215_v1 = vpop.eup %214  ;;  %v148_v2 = vmul.f32 %v213_v0, %v145_v62 }
  0xbb   :  { %v155_v3 = vmul.f32 %v215_v1, %v146_v63 }
  0xbc   :  { %v150_v5 = vsel %vm149_vm2, %v145_v62, %v148_v2 }
  0xbd   :  { %v157_v6 = vsel %vm156_vm3, %v146_v63, %v155_v3  ;;  %v153_v10 = vsel %vm151_vm5, %v152_v7, %v150_v5 }
  0xbe   :  { %v160_v8 = vsel %vm158_vm4, %v159_v4, %v157_v6 }
  0xbf   :  { %v171_v9 = vrot.slane %v160_v8, 7 }
  0xc1   :  { %v172_v11 = vsel %vm164_vm0, %v171_v9, %v153_v10 }
  0xc2   :  { %174 = vst.msk [vmem:[#allocation8] sm:$0x3] %vm167_vm1, %v172_v11 }
  0xc3   :  { %267 = shalt.err (!%p264_p0)
}
  0xc4   :  { %194 = dma.vmem_to_hbm [thread:$0]  %s192_s23, 32, %s320_s2, [#allocation9]  }
  0xc5   :  { %278 = dma.done.wait [#allocation6], 32  }
  0xc6   :  { %279 = vsyncadd [#allocation6], 4294967264 }
  0xc7   :  { %280 = dma.done.wait [#allocation9], 32  }
  0xc8   :  { %281 = vsyncadd [#allocation9], 4294967264 }
  0xc9   :  { %201 = vsyncpa [#allocation5], 1 }
  0xca   :  { %202 = vsyncpa [#allocation6], 1 }
  0xcb   :  { %203 = vsyncpa [#allocation9], 1 }

</bundles_post_ra>
